<compile_context>
chip_gen: v5e
topology: v5e:2x2
jax: 0.10.0
libtpu: 0.0.40
codegen_flags: <defaults>
</compile_context>

<pallas_src>
import jax
import jax.numpy as jnp
from jax.experimental import pallas as pl
from jax.experimental.pallas import tpu as pltpu

H = 32        # LSTM hidden size (hard-coded inside the PyTorch module)
IN_FEAT = 3   # LSTM input size  (hard-coded inside the PyTorch module)
F_PAD = 8     # feature dim zero-padded for a clean in-kernel MXU dot
FC1 = 16      # fc1 output features
LANES = 128
SUBLANES = 8


def _round_up(n, m):
    return (n + m - 1) // m * m


def bi_lstm_kernel(x_ref, wih_ref, bias_ref, whh_ref, attn_ref,
                   w1_ref, b1_ref, w2_ref, b2_ref, out_ref):
    """Whole forward pass in one kernel invocation.

    x_ref:    (T*Bp, F_PAD)   time-major input, batch- and feature-padded, flattened
    wih_ref:  (F_PAD, 4H)     W_ih^T (zero rows for the feature padding)
    bias_ref: (1, 4H)         b_ih + b_hh
    whh_ref:  (H, 4H)         W_hh^T   (PyTorch gate order i, f, g, o)
    attn_ref: (1, H)          attention weights (row vector)
    w1_ref:   (H, FC1),  b1_ref: (1, FC1)
    w2_ref:   (FC1, OUT_pad), b2_ref: (1, OUT_pad)   (lane-padded to 128)
    out_ref:  (Bp, OUT_pad)
    """
    Bp = out_ref.shape[0]
    T = x_ref.shape[0] // Bp
    G = 4 * H

    # ---- hoisted loop invariants ------------------------------------------
    whh = whh_ref[...]                                           # (H, 4H)
    attn_b = jnp.broadcast_to(attn_ref[...], (Bp, H))            # (Bp, H)

    # Lane masks for the single-sigmoid gate trick: tanh(x) = 2*sigmoid(2x) - 1.
    lane = jax.lax.broadcasted_iota(jnp.int32, (1, G), 1)
    is_g = jnp.logical_and(lane >= 2 * H, lane < 3 * H)
    pre_scale = jnp.broadcast_to(jnp.where(is_g, 2.0, 1.0), (Bp, G))  # 2 on g-lanes
    post_mul = pre_scale                                               # 2 on g-lanes
    post_add = jnp.broadcast_to(jnp.where(is_g, -1.0, 0.0), (Bp, G))  # -1 on g-lanes

    # Input projection for ALL timesteps: one (T*Bp, F_PAD) @ (F_PAD, 4H) MXU dot,
    # bias folded in once (no per-step K=3 dot, no xg HBM round trip).
    xg = (jnp.dot(x_ref[...], wih_ref[...], preferred_element_type=jnp.float32)
          + jnp.broadcast_to(bias_ref[...], (T * Bp, G)))        # (T*Bp, 4H)

    h = jnp.zeros((Bp, H), jnp.float32)
    c = jnp.zeros((Bp, H), jnp.float32)
    l = jnp.zeros((Bp, 1), jnp.float32)      # softmax denominator  sum_t exp(s_t)
    acc = jnp.zeros((Bp, H), jnp.float32)    # softmax numerator    sum_t exp(s_t) h_t

    for t in range(T):  # T is static -> fully unrolled (fine at small T)
        # Exactly one MXU dot per step on the serial critical path.
        gates = xg[t * Bp:(t + 1) * Bp, :] + jnp.dot(
            h, whh, preferred_element_type=jnp.float32)          # (Bp, 4H)

        # One full-vreg EUP pass: sigmoid of pre-scaled gates, then recover tanh on
        # the g quarter with a masked FMA (cheap VPU work in spare VALU slots).
        y = jax.nn.sigmoid(gates * pre_scale)
        y = y * post_mul + post_add
        i_g = y[:, 0 * H:1 * H]
        f_g = y[:, 1 * H:2 * H]
        g_g = y[:, 2 * H:3 * H]
        o_g = y[:, 3 * H:4 * H]

        c = f_g * c + i_g * g_g
        h = o_g * jnp.tanh(c)

        # Attention logit relu(h . attn_w): VPU multiply + lane reduce (no MXU).
        # |h| < 1  =>  s <= ||attn_w||_1 ~ 5.7, so exp(s) is fp32-safe with no
        # running max; accumulate directly, normalize once after the loop.
        s = jnp.maximum(jnp.sum(h * attn_b, axis=-1, keepdims=True), 0.0)  # (Bp, 1)
        p = jnp.exp(s)
        l = l + p
        acc = acc + p * h

    ctx = acc * pl.reciprocal(l, approx=True)                    # (Bp, H)

    # fc1 -> relu -> fc2 (output lane-padded to 128 for an unmasked store)
    h1 = jnp.dot(ctx, w1_ref[...], preferred_element_type=jnp.float32) + b1_ref[...]
    h1 = jnp.maximum(h1, 0.0)
    out_ref[...] = (jnp.dot(h1, w2_ref[...], preferred_element_type=jnp.float32)
                    + b2_ref[...])


@jax.jit
def bi_lstm_forward(x, params):
    """x: (B, T, IN_FEAT) float32 (batch-first, like the PyTorch module)."""
    B, T, F = x.shape
    Bp = _round_up(max(B, 1), SUBLANES)

    # Time-major, pad batch to a sublane multiple and features to F_PAD, flatten T.
    xt = jnp.transpose(x, (1, 0, 2)).astype(jnp.float32)         # (T, B, F)
    xt = jnp.pad(xt, ((0, 0), (0, Bp - B), (0, F_PAD - F)))      # (T, Bp, F_PAD)
    x_flat = xt.reshape(T * Bp, F_PAD)

    wih_t = jnp.zeros((F_PAD, 4 * H), jnp.float32).at[:IN_FEAT, :].set(
        params["w_ih"].T.astype(jnp.float32))
    bias = (params["b_ih"] + params["b_hh"]).astype(jnp.float32)[None, :]   # (1, 4H)
    whh_t = params["w_hh"].T.astype(jnp.float32)                 # (H, 4H)
    attn_row = params["attn_w"].T.astype(jnp.float32)            # (1, H)
    w1_t = params["w1"].T.astype(jnp.float32)                    # (H, FC1)
    b1 = params["b1"][None, :].astype(jnp.float32)               # (1, FC1)

    out_size = params["w2"].shape[0]
    out_pad = _round_up(out_size, LANES)                         # lane-dense output
    w2_t = jnp.zeros((FC1, out_pad), jnp.float32).at[:, :out_size].set(
        params["w2"].T.astype(jnp.float32))
    b2 = jnp.zeros((1, out_pad), jnp.float32).at[:, :out_size].set(
        params["b2"].astype(jnp.float32))

    flops = (2 * T * Bp * F_PAD * 4 * H            # input projection
             + 2 * T * Bp * H * 4 * H              # recurrent matmuls
             + 2 * Bp * H * FC1 + 2 * Bp * FC1 * out_pad)
    transcendentals = T * Bp * (4 * H + H + 1) + Bp
    bytes_accessed = 4 * (T * Bp * F_PAD + F_PAD * 4 * H + 4 * H + H * 4 * H + H
                          + H * FC1 + FC1 + FC1 * out_pad + out_pad + Bp * out_pad)

    vmem = pl.BlockSpec(memory_space=pltpu.MemorySpace.VMEM)
    out_full = pl.pallas_call(
        bi_lstm_kernel,
        out_shape=jax.ShapeDtypeStruct((Bp, out_pad), jnp.float32),
        in_specs=[vmem] * 9,
        out_specs=vmem,
        cost_estimate=pl.CostEstimate(flops=flops,
                                      transcendentals=transcendentals,
                                      bytes_accessed=bytes_accessed),
    )(x_flat, wih_t, bias, whh_t, attn_row, w1_t, b1, w2_t, b2)

    return out_full[:B, :out_size]


def init_params(key, output_size):
    """Deterministic synthetic parameters with the same shapes as the PyTorch module."""
    ks = jax.random.split(key, 9)
    stdv = 1.0 / jnp.sqrt(jnp.float32(H))
    s1 = 1.0 / jnp.sqrt(jnp.float32(H))      # fc1 fan_in = 32
    s2 = 1.0 / jnp.sqrt(jnp.float32(FC1))    # fc2 fan_in = 16
    u = lambda k, shape, s: jax.random.uniform(k, shape, jnp.float32, -s, s)
    return {
        "w_ih": u(ks[0], (4 * H, IN_FEAT), stdv),    # nn.LSTM weight_ih_l0
        "w_hh": u(ks[1], (4 * H, H), stdv),          # nn.LSTM weight_hh_l0
        "b_ih": u(ks[2], (4 * H,), stdv),
        "b_hh": u(ks[3], (4 * H,), stdv),
        "attn_w": u(ks[4], (H, 1), stdv),            # Attn.weights
        "w1": u(ks[5], (FC1, H), s1),                # fc1
        "b1": u(ks[6], (FC1,), s1),
        "w2": u(ks[7], (output_size, FC1), s2),      # fc2
        "b2": u(ks[8], (output_size,), s2),
    }


def reference_forward(x, params):
    """Pure-JAX reference mirroring the PyTorch forward exactly."""
    B, T, _ = x.shape
    w_ih, w_hh = params["w_ih"], params["w_hh"]
    b = params["b_ih"] + params["b_hh"]

    def step(carry, x_t):
        h, c = carry
        gates = x_t @ w_ih.T + h @ w_hh.T + b
        i = jax.nn.sigmoid(gates[:, :H])
        f = jax.nn.sigmoid(gates[:, H:2 * H])
        g = jnp.tanh(gates[:, 2 * H:3 * H])
        o = jax.nn.sigmoid(gates[:, 3 * H:])
        c = f * c + i * g
        h = o * jnp.tanh(c)
        return (h, c), h

    init = (jnp.zeros((B, H), jnp.float32), jnp.zeros((B, H), jnp.float32))
    _, outs = jax.lax.scan(step, init, jnp.swapaxes(x, 0, 1))
    outs = jnp.swapaxes(outs, 0, 1)                             # (B, T, H)
    scores = jnp.squeeze(outs @ params["attn_w"], -1)           # (B, T)
    attn = jax.nn.softmax(jax.nn.relu(scores), axis=-1)
    ctx = jnp.sum(outs * attn[..., None], axis=1)               # (B, H)
    h1 = jax.nn.relu(ctx @ params["w1"].T + params["b1"])
    return h1 @ params["w2"].T + params["b2"]


if __name__ == "__main__":
    key = jax.random.PRNGKey(0)
    kx, kp = jax.random.split(key)
    B, T = 2, 8
    OUTPUT_SIZE = 4

    x = jax.random.normal(kx, (B, T, IN_FEAT), jnp.float32)
    params = init_params(kp, OUTPUT_SIZE)

    out = bi_lstm_forward(x, params)
    out = jax.block_until_ready(out)

    ref = reference_forward(x, params)
    assert out.shape == (B, OUTPUT_SIZE), out.shape
    assert jnp.allclose(out, ref, rtol=1e-3, atol=1e-3), (out, ref)
    print("KERNEL_OK")
</pallas_src>

<mosaic_0001>
module attributes {stable_mosaic.version = 11 : i64} {
  func.func @bi_lstm_kernel(%arg0: memref<64x8xf32, #tpu.memory_space<vmem>>, %arg1: memref<8x128xf32, #tpu.memory_space<vmem>>, %arg2: memref<1x128xf32, #tpu.memory_space<vmem>>, %arg3: memref<32x128xf32, #tpu.memory_space<vmem>>, %arg4: memref<1x32xf32, #tpu.memory_space<vmem>>, %arg5: memref<32x16xf32, #tpu.memory_space<vmem>>, %arg6: memref<1x16xf32, #tpu.memory_space<vmem>>, %arg7: memref<16x128xf32, #tpu.memory_space<vmem>>, %arg8: memref<1x128xf32, #tpu.memory_space<vmem>>, %arg9: memref<8x128xf32, #tpu.memory_space<vmem>>) attributes {dimension_semantics = [], scalar_prefetch = 0 : i64, scratch_operands = 0 : i64, tpu.core_type = #tpu.core_type<tc>} {
    %c0 = arith.constant 0 : index
    %c0_0 = arith.constant 0 : index
    %0 = vector.load %arg3[%c0, %c0_0] : memref<32x128xf32, #tpu.memory_space<vmem>>, vector<32x128xf32>
    %c0_1 = arith.constant 0 : index
    %c0_2 = arith.constant 0 : index
    %1 = vector.load %arg4[%c0_1, %c0_2] : memref<1x32xf32, #tpu.memory_space<vmem>>, vector<1x32xf32>
    %2 = vector.shape_cast %1 : vector<1x32xf32> to vector<1x32xf32>
    %3 = vector.broadcast %2 : vector<1x32xf32> to vector<8x32xf32>
    %4 = tpu.iota {dimensions = array<i32: 1>} : vector<1x128xi32>
    %c64_i32 = arith.constant 64 : i32
    %5 = vector.broadcast %c64_i32 : i32 to vector<1x128xi32>
    %6 = arith.cmpi sge, %4, %5 : vector<1x128xi32>
    %c96_i32 = arith.constant 96 : i32
    %7 = vector.broadcast %c96_i32 : i32 to vector<1x128xi32>
    %8 = arith.cmpi slt, %4, %7 : vector<1x128xi32>
    %9 = arith.andi %6, %8 : vector<1x128xi1>
    %cst = arith.constant 2.000000e+00 : f32
    %cst_3 = arith.constant 1.000000e+00 : f32
    %10 = vector.broadcast %cst : f32 to vector<1x128xf32>
    %11 = vector.broadcast %cst_3 : f32 to vector<1x128xf32>
    %12 = arith.select %9, %10, %11 : vector<1x128xi1>, vector<1x128xf32>
    %13 = vector.shape_cast %12 : vector<1x128xf32> to vector<1x128xf32>
    %14 = vector.broadcast %13 : vector<1x128xf32> to vector<8x128xf32>
    %cst_4 = arith.constant -1.000000e+00 : f32
    %cst_5 = arith.constant 0.000000e+00 : f32
    %15 = vector.broadcast %cst_4 : f32 to vector<1x128xf32>
    %16 = vector.broadcast %cst_5 : f32 to vector<1x128xf32>
    %17 = arith.select %9, %15, %16 : vector<1x128xi1>, vector<1x128xf32>
    %18 = vector.shape_cast %17 : vector<1x128xf32> to vector<1x128xf32>
    %19 = vector.broadcast %18 : vector<1x128xf32> to vector<8x128xf32>
    %c0_6 = arith.constant 0 : index
    %c0_7 = arith.constant 0 : index
    %20 = vector.load %arg0[%c0_6, %c0_7] : memref<64x8xf32, #tpu.memory_space<vmem>>, vector<64x8xf32>
    %c0_8 = arith.constant 0 : index
    %c0_9 = arith.constant 0 : index
    %21 = vector.load %arg1[%c0_8, %c0_9] : memref<8x128xf32, #tpu.memory_space<vmem>>, vector<8x128xf32>
    %cst_10 = arith.constant dense<0.000000e+00> : vector<64x128xf32>
    %22 = tpu.matmul %20, %21, %cst_10 {dimension_numbers = #tpu.dot_dimension_numbers<[1], [0], [0], [1], [0, 0, 1, 1], [], []>} : vector<64x8xf32>, vector<8x128xf32>, vector<64x128xf32> -> vector<64x128xf32>
    %c0_11 = arith.constant 0 : index
    %c0_12 = arith.constant 0 : index
    %23 = vector.load %arg2[%c0_11, %c0_12] : memref<1x128xf32, #tpu.memory_space<vmem>>, vector<1x128xf32>
    %24 = vector.shape_cast %23 : vector<1x128xf32> to vector<1x128xf32>
    %25 = vector.broadcast %24 : vector<1x128xf32> to vector<64x128xf32>
    %26 = arith.addf %22, %25 : vector<64x128xf32>
    %cst_13 = arith.constant 0.000000e+00 : f32
    %27 = vector.broadcast %cst_13 : f32 to vector<8x32xf32>
    %cst_14 = arith.constant 0.000000e+00 : f32
    %28 = vector.broadcast %cst_14 : f32 to vector<8x32xf32>
    %cst_15 = arith.constant 0.000000e+00 : f32
    %29 = vector.broadcast %cst_15 : f32 to vector<8x1xf32>
    %cst_16 = arith.constant 0.000000e+00 : f32
    %30 = vector.broadcast %cst_16 : f32 to vector<8x32xf32>
    %31 = vector.extract_strided_slice %26 {offsets = [0, 0], sizes = [8, 128], strides = [1, 1]} : vector<64x128xf32> to vector<8x128xf32>
    %cst_17 = arith.constant dense<0.000000e+00> : vector<8x128xf32>
    %32 = tpu.matmul %27, %0, %cst_17 {dimension_numbers = #tpu.dot_dimension_numbers<[1], [0], [0], [1], [0, 0, 1, 1], [], []>} : vector<8x32xf32>, vector<32x128xf32>, vector<8x128xf32> -> vector<8x128xf32>
    %33 = arith.addf %31, %32 : vector<8x128xf32>
    %34 = arith.mulf %33, %14 : vector<8x128xf32>
    %35 = arith.negf %34 : vector<8x128xf32>
    %36 = math.exp %35 : vector<8x128xf32>
    %cst_18 = arith.constant 1.000000e+00 : f32
    %37 = vector.broadcast %cst_18 : f32 to vector<8x128xf32>
    %38 = arith.addf %37, %36 : vector<8x128xf32>
    %39 = arith.divf %37, %38 : vector<8x128xf32>
    %40 = arith.mulf %39, %14 : vector<8x128xf32>
    %41 = arith.addf %40, %19 : vector<8x128xf32>
    %42 = vector.extract_strided_slice %41 {offsets = [0, 0], sizes = [8, 32], strides = [1, 1]} : vector<8x128xf32> to vector<8x32xf32>
    %43 = vector.extract_strided_slice %41 {offsets = [0, 32], sizes = [8, 32], strides = [1, 1]} : vector<8x128xf32> to vector<8x32xf32>
    %44 = vector.extract_strided_slice %41 {offsets = [0, 64], sizes = [8, 32], strides = [1, 1]} : vector<8x128xf32> to vector<8x32xf32>
    %45 = vector.extract_strided_slice %41 {offsets = [0, 96], sizes = [8, 32], strides = [1, 1]} : vector<8x128xf32> to vector<8x32xf32>
    %46 = arith.mulf %43, %28 : vector<8x32xf32>
    %47 = arith.mulf %42, %44 : vector<8x32xf32>
    %48 = arith.addf %46, %47 : vector<8x32xf32>
    %49 = math.tanh %48 : vector<8x32xf32>
    %50 = arith.mulf %45, %49 : vector<8x32xf32>
    %51 = arith.mulf %50, %3 : vector<8x32xf32>
    %cst_19 = arith.constant dense<0.000000e+00> : vector<8xf32>
    %52 = vector.multi_reduction <add>, %51, %cst_19 [1] : vector<8x32xf32> to vector<8xf32>
    %53 = vector.shape_cast %52 : vector<8xf32> to vector<8x1xf32>
    %cst_20 = arith.constant 0.000000e+00 : f32
    %54 = vector.broadcast %cst_20 : f32 to vector<8x1xf32>
    %55 = arith.maximumf %53, %54 : vector<8x1xf32>
    %56 = math.exp %55 : vector<8x1xf32>
    %57 = arith.addf %29, %56 : vector<8x1xf32>
    %58 = vector.broadcast %56 : vector<8x1xf32> to vector<8x32xf32>
    %59 = arith.mulf %58, %50 : vector<8x32xf32>
    %60 = arith.addf %30, %59 : vector<8x32xf32>
    %61 = vector.extract_strided_slice %26 {offsets = [8, 0], sizes = [8, 128], strides = [1, 1]} : vector<64x128xf32> to vector<8x128xf32>
    %cst_21 = arith.constant dense<0.000000e+00> : vector<8x128xf32>
    %62 = tpu.matmul %50, %0, %cst_21 {dimension_numbers = #tpu.dot_dimension_numbers<[1], [0], [0], [1], [0, 0, 1, 1], [], []>} : vector<8x32xf32>, vector<32x128xf32>, vector<8x128xf32> -> vector<8x128xf32>
    %63 = arith.addf %61, %62 : vector<8x128xf32>
    %64 = arith.mulf %63, %14 : vector<8x128xf32>
    %65 = arith.negf %64 : vector<8x128xf32>
    %66 = math.exp %65 : vector<8x128xf32>
    %cst_22 = arith.constant 1.000000e+00 : f32
    %67 = vector.broadcast %cst_22 : f32 to vector<8x128xf32>
    %68 = arith.addf %67, %66 : vector<8x128xf32>
    %69 = arith.divf %67, %68 : vector<8x128xf32>
    %70 = arith.mulf %69, %14 : vector<8x128xf32>
    %71 = arith.addf %70, %19 : vector<8x128xf32>
    %72 = vector.extract_strided_slice %71 {offsets = [0, 0], sizes = [8, 32], strides = [1, 1]} : vector<8x128xf32> to vector<8x32xf32>
    %73 = vector.extract_strided_slice %71 {offsets = [0, 32], sizes = [8, 32], strides = [1, 1]} : vector<8x128xf32> to vector<8x32xf32>
    %74 = vector.extract_strided_slice %71 {offsets = [0, 64], sizes = [8, 32], strides = [1, 1]} : vector<8x128xf32> to vector<8x32xf32>
    %75 = vector.extract_strided_slice %71 {offsets = [0, 96], sizes = [8, 32], strides = [1, 1]} : vector<8x128xf32> to vector<8x32xf32>
    %76 = arith.mulf %73, %48 : vector<8x32xf32>
    %77 = arith.mulf %72, %74 : vector<8x32xf32>
    %78 = arith.addf %76, %77 : vector<8x32xf32>
    %79 = math.tanh %78 : vector<8x32xf32>
    %80 = arith.mulf %75, %79 : vector<8x32xf32>
    %81 = arith.mulf %80, %3 : vector<8x32xf32>
    %cst_23 = arith.constant dense<0.000000e+00> : vector<8xf32>
    %82 = vector.multi_reduction <add>, %81, %cst_23 [1] : vector<8x32xf32> to vector<8xf32>
    %83 = vector.shape_cast %82 : vector<8xf32> to vector<8x1xf32>
    %cst_24 = arith.constant 0.000000e+00 : f32
    %84 = vector.broadcast %cst_24 : f32 to vector<8x1xf32>
    %85 = arith.maximumf %83, %84 : vector<8x1xf32>
    %86 = math.exp %85 : vector<8x1xf32>
    %87 = arith.addf %57, %86 : vector<8x1xf32>
    %88 = vector.broadcast %86 : vector<8x1xf32> to vector<8x32xf32>
    %89 = arith.mulf %88, %80 : vector<8x32xf32>
    %90 = arith.addf %60, %89 : vector<8x32xf32>
    %91 = vector.extract_strided_slice %26 {offsets = [16, 0], sizes = [8, 128], strides = [1, 1]} : vector<64x128xf32> to vector<8x128xf32>
    %cst_25 = arith.constant dense<0.000000e+00> : vector<8x128xf32>
    %92 = tpu.matmul %80, %0, %cst_25 {dimension_numbers = #tpu.dot_dimension_numbers<[1], [0], [0], [1], [0, 0, 1, 1], [], []>} : vector<8x32xf32>, vector<32x128xf32>, vector<8x128xf32> -> vector<8x128xf32>
    %93 = arith.addf %91, %92 : vector<8x128xf32>
    %94 = arith.mulf %93, %14 : vector<8x128xf32>
    %95 = arith.negf %94 : vector<8x128xf32>
    %96 = math.exp %95 : vector<8x128xf32>
    %cst_26 = arith.constant 1.000000e+00 : f32
    %97 = vector.broadcast %cst_26 : f32 to vector<8x128xf32>
    %98 = arith.addf %97, %96 : vector<8x128xf32>
    %99 = arith.divf %97, %98 : vector<8x128xf32>
    %100 = arith.mulf %99, %14 : vector<8x128xf32>
    %101 = arith.addf %100, %19 : vector<8x128xf32>
    %102 = vector.extract_strided_slice %101 {offsets = [0, 0], sizes = [8, 32], strides = [1, 1]} : vector<8x128xf32> to vector<8x32xf32>
    %103 = vector.extract_strided_slice %101 {offsets = [0, 32], sizes = [8, 32], strides = [1, 1]} : vector<8x128xf32> to vector<8x32xf32>
    %104 = vector.extract_strided_slice %101 {offsets = [0, 64], sizes = [8, 32], strides = [1, 1]} : vector<8x128xf32> to vector<8x32xf32>
    %105 = vector.extract_strided_slice %101 {offsets = [0, 96], sizes = [8, 32], strides = [1, 1]} : vector<8x128xf32> to vector<8x32xf32>
    %106 = arith.mulf %103, %78 : vector<8x32xf32>
    %107 = arith.mulf %102, %104 : vector<8x32xf32>
    %108 = arith.addf %106, %107 : vector<8x32xf32>
    %109 = math.tanh %108 : vector<8x32xf32>
    %110 = arith.mulf %105, %109 : vector<8x32xf32>
    %111 = arith.mulf %110, %3 : vector<8x32xf32>
    %cst_27 = arith.constant dense<0.000000e+00> : vector<8xf32>
    %112 = vector.multi_reduction <add>, %111, %cst_27 [1] : vector<8x32xf32> to vector<8xf32>
    %113 = vector.shape_cast %112 : vector<8xf32> to vector<8x1xf32>
    %cst_28 = arith.constant 0.000000e+00 : f32
    %114 = vector.broadcast %cst_28 : f32 to vector<8x1xf32>
    %115 = arith.maximumf %113, %114 : vector<8x1xf32>
    %116 = math.exp %115 : vector<8x1xf32>
    %117 = arith.addf %87, %116 : vector<8x1xf32>
    %118 = vector.broadcast %116 : vector<8x1xf32> to vector<8x32xf32>
    %119 = arith.mulf %118, %110 : vector<8x32xf32>
    %120 = arith.addf %90, %119 : vector<8x32xf32>
    %121 = vector.extract_strided_slice %26 {offsets = [24, 0], sizes = [8, 128], strides = [1, 1]} : vector<64x128xf32> to vector<8x128xf32>
    %cst_29 = arith.constant dense<0.000000e+00> : vector<8x128xf32>
    %122 = tpu.matmul %110, %0, %cst_29 {dimension_numbers = #tpu.dot_dimension_numbers<[1], [0], [0], [1], [0, 0, 1, 1], [], []>} : vector<8x32xf32>, vector<32x128xf32>, vector<8x128xf32> -> vector<8x128xf32>
    %123 = arith.addf %121, %122 : vector<8x128xf32>
    %124 = arith.mulf %123, %14 : vector<8x128xf32>
    %125 = arith.negf %124 : vector<8x128xf32>
    %126 = math.exp %125 : vector<8x128xf32>
    %cst_30 = arith.constant 1.000000e+00 : f32
    %127 = vector.broadcast %cst_30 : f32 to vector<8x128xf32>
    %128 = arith.addf %127, %126 : vector<8x128xf32>
    %129 = arith.divf %127, %128 : vector<8x128xf32>
    %130 = arith.mulf %129, %14 : vector<8x128xf32>
    %131 = arith.addf %130, %19 : vector<8x128xf32>
    %132 = vector.extract_strided_slice %131 {offsets = [0, 0], sizes = [8, 32], strides = [1, 1]} : vector<8x128xf32> to vector<8x32xf32>
    %133 = vector.extract_strided_slice %131 {offsets = [0, 32], sizes = [8, 32], strides = [1, 1]} : vector<8x128xf32> to vector<8x32xf32>
    %134 = vector.extract_strided_slice %131 {offsets = [0, 64], sizes = [8, 32], strides = [1, 1]} : vector<8x128xf32> to vector<8x32xf32>
    %135 = vector.extract_strided_slice %131 {offsets = [0, 96], sizes = [8, 32], strides = [1, 1]} : vector<8x128xf32> to vector<8x32xf32>
    %136 = arith.mulf %133, %108 : vector<8x32xf32>
    %137 = arith.mulf %132, %134 : vector<8x32xf32>
    %138 = arith.addf %136, %137 : vector<8x32xf32>
    %139 = math.tanh %138 : vector<8x32xf32>
    %140 = arith.mulf %135, %139 : vector<8x32xf32>
    %141 = arith.mulf %140, %3 : vector<8x32xf32>
    %cst_31 = arith.constant dense<0.000000e+00> : vector<8xf32>
    %142 = vector.multi_reduction <add>, %141, %cst_31 [1] : vector<8x32xf32> to vector<8xf32>
    %143 = vector.shape_cast %142 : vector<8xf32> to vector<8x1xf32>
    %cst_32 = arith.constant 0.000000e+00 : f32
    %144 = vector.broadcast %cst_32 : f32 to vector<8x1xf32>
    %145 = arith.maximumf %143, %144 : vector<8x1xf32>
    %146 = math.exp %145 : vector<8x1xf32>
    %147 = arith.addf %117, %146 : vector<8x1xf32>
    %148 = vector.broadcast %146 : vector<8x1xf32> to vector<8x32xf32>
    %149 = arith.mulf %148, %140 : vector<8x32xf32>
    %150 = arith.addf %120, %149 : vector<8x32xf32>
    %151 = vector.extract_strided_slice %26 {offsets = [32, 0], sizes = [8, 128], strides = [1, 1]} : vector<64x128xf32> to vector<8x128xf32>
    %cst_33 = arith.constant dense<0.000000e+00> : vector<8x128xf32>
    %152 = tpu.matmul %140, %0, %cst_33 {dimension_numbers = #tpu.dot_dimension_numbers<[1], [0], [0], [1], [0, 0, 1, 1], [], []>} : vector<8x32xf32>, vector<32x128xf32>, vector<8x128xf32> -> vector<8x128xf32>
    %153 = arith.addf %151, %152 : vector<8x128xf32>
    %154 = arith.mulf %153, %14 : vector<8x128xf32>
    %155 = arith.negf %154 : vector<8x128xf32>
    %156 = math.exp %155 : vector<8x128xf32>
    %cst_34 = arith.constant 1.000000e+00 : f32
    %157 = vector.broadcast %cst_34 : f32 to vector<8x128xf32>
    %158 = arith.addf %157, %156 : vector<8x128xf32>
    %159 = arith.divf %157, %158 : vector<8x128xf32>
    %160 = arith.mulf %159, %14 : vector<8x128xf32>
    %161 = arith.addf %160, %19 : vector<8x128xf32>
    %162 = vector.extract_strided_slice %161 {offsets = [0, 0], sizes = [8, 32], strides = [1, 1]} : vector<8x128xf32> to vector<8x32xf32>
    %163 = vector.extract_strided_slice %161 {offsets = [0, 32], sizes = [8, 32], strides = [1, 1]} : vector<8x128xf32> to vector<8x32xf32>
    %164 = vector.extract_strided_slice %161 {offsets = [0, 64], sizes = [8, 32], strides = [1, 1]} : vector<8x128xf32> to vector<8x32xf32>
    %165 = vector.extract_strided_slice %161 {offsets = [0, 96], sizes = [8, 32], strides = [1, 1]} : vector<8x128xf32> to vector<8x32xf32>
    %166 = arith.mulf %163, %138 : vector<8x32xf32>
    %167 = arith.mulf %162, %164 : vector<8x32xf32>
    %168 = arith.addf %166, %167 : vector<8x32xf32>
    %169 = math.tanh %168 : vector<8x32xf32>
    %170 = arith.mulf %165, %169 : vector<8x32xf32>
    %171 = arith.mulf %170, %3 : vector<8x32xf32>
    %cst_35 = arith.constant dense<0.000000e+00> : vector<8xf32>
    %172 = vector.multi_reduction <add>, %171, %cst_35 [1] : vector<8x32xf32> to vector<8xf32>
    %173 = vector.shape_cast %172 : vector<8xf32> to vector<8x1xf32>
    %cst_36 = arith.constant 0.000000e+00 : f32
    %174 = vector.broadcast %cst_36 : f32 to vector<8x1xf32>
    %175 = arith.maximumf %173, %174 : vector<8x1xf32>
    %176 = math.exp %175 : vector<8x1xf32>
    %177 = arith.addf %147, %176 : vector<8x1xf32>
    %178 = vector.broadcast %176 : vector<8x1xf32> to vector<8x32xf32>
    %179 = arith.mulf %178, %170 : vector<8x32xf32>
    %180 = arith.addf %150, %179 : vector<8x32xf32>
    %181 = vector.extract_strided_slice %26 {offsets = [40, 0], sizes = [8, 128], strides = [1, 1]} : vector<64x128xf32> to vector<8x128xf32>
    %cst_37 = arith.constant dense<0.000000e+00> : vector<8x128xf32>
    %182 = tpu.matmul %170, %0, %cst_37 {dimension_numbers = #tpu.dot_dimension_numbers<[1], [0], [0], [1], [0, 0, 1, 1], [], []>} : vector<8x32xf32>, vector<32x128xf32>, vector<8x128xf32> -> vector<8x128xf32>
    %183 = arith.addf %181, %182 : vector<8x128xf32>
    %184 = arith.mulf %183, %14 : vector<8x128xf32>
    %185 = arith.negf %184 : vector<8x128xf32>
    %186 = math.exp %185 : vector<8x128xf32>
    %cst_38 = arith.constant 1.000000e+00 : f32
    %187 = vector.broadcast %cst_38 : f32 to vector<8x128xf32>
    %188 = arith.addf %187, %186 : vector<8x128xf32>
    %189 = arith.divf %187, %188 : vector<8x128xf32>
    %190 = arith.mulf %189, %14 : vector<8x128xf32>
    %191 = arith.addf %190, %19 : vector<8x128xf32>
    %192 = vector.extract_strided_slice %191 {offsets = [0, 0], sizes = [8, 32], strides = [1, 1]} : vector<8x128xf32> to vector<8x32xf32>
    %193 = vector.extract_strided_slice %191 {offsets = [0, 32], sizes = [8, 32], strides = [1, 1]} : vector<8x128xf32> to vector<8x32xf32>
    %194 = vector.extract_strided_slice %191 {offsets = [0, 64], sizes = [8, 32], strides = [1, 1]} : vector<8x128xf32> to vector<8x32xf32>
    %195 = vector.extract_strided_slice %191 {offsets = [0, 96], sizes = [8, 32], strides = [1, 1]} : vector<8x128xf32> to vector<8x32xf32>
    %196 = arith.mulf %193, %168 : vector<8x32xf32>
    %197 = arith.mulf %192, %194 : vector<8x32xf32>
    %198 = arith.addf %196, %197 : vector<8x32xf32>
    %199 = math.tanh %198 : vector<8x32xf32>
    %200 = arith.mulf %195, %199 : vector<8x32xf32>
    %201 = arith.mulf %200, %3 : vector<8x32xf32>
    %cst_39 = arith.constant dense<0.000000e+00> : vector<8xf32>
    %202 = vector.multi_reduction <add>, %201, %cst_39 [1] : vector<8x32xf32> to vector<8xf32>
    %203 = vector.shape_cast %202 : vector<8xf32> to vector<8x1xf32>
    %cst_40 = arith.constant 0.000000e+00 : f32
    %204 = vector.broadcast %cst_40 : f32 to vector<8x1xf32>
    %205 = arith.maximumf %203, %204 : vector<8x1xf32>
    %206 = math.exp %205 : vector<8x1xf32>
    %207 = arith.addf %177, %206 : vector<8x1xf32>
    %208 = vector.broadcast %206 : vector<8x1xf32> to vector<8x32xf32>
    %209 = arith.mulf %208, %200 : vector<8x32xf32>
    %210 = arith.addf %180, %209 : vector<8x32xf32>
    %211 = vector.extract_strided_slice %26 {offsets = [48, 0], sizes = [8, 128], strides = [1, 1]} : vector<64x128xf32> to vector<8x128xf32>
    %cst_41 = arith.constant dense<0.000000e+00> : vector<8x128xf32>
    %212 = tpu.matmul %200, %0, %cst_41 {dimension_numbers = #tpu.dot_dimension_numbers<[1], [0], [0], [1], [0, 0, 1, 1], [], []>} : vector<8x32xf32>, vector<32x128xf32>, vector<8x128xf32> -> vector<8x128xf32>
    %213 = arith.addf %211, %212 : vector<8x128xf32>
    %214 = arith.mulf %213, %14 : vector<8x128xf32>
    %215 = arith.negf %214 : vector<8x128xf32>
    %216 = math.exp %215 : vector<8x128xf32>
    %cst_42 = arith.constant 1.000000e+00 : f32
    %217 = vector.broadcast %cst_42 : f32 to vector<8x128xf32>
    %218 = arith.addf %217, %216 : vector<8x128xf32>
    %219 = arith.divf %217, %218 : vector<8x128xf32>
    %220 = arith.mulf %219, %14 : vector<8x128xf32>
    %221 = arith.addf %220, %19 : vector<8x128xf32>
    %222 = vector.extract_strided_slice %221 {offsets = [0, 0], sizes = [8, 32], strides = [1, 1]} : vector<8x128xf32> to vector<8x32xf32>
    %223 = vector.extract_strided_slice %221 {offsets = [0, 32], sizes = [8, 32], strides = [1, 1]} : vector<8x128xf32> to vector<8x32xf32>
    %224 = vector.extract_strided_slice %221 {offsets = [0, 64], sizes = [8, 32], strides = [1, 1]} : vector<8x128xf32> to vector<8x32xf32>
    %225 = vector.extract_strided_slice %221 {offsets = [0, 96], sizes = [8, 32], strides = [1, 1]} : vector<8x128xf32> to vector<8x32xf32>
    %226 = arith.mulf %223, %198 : vector<8x32xf32>
    %227 = arith.mulf %222, %224 : vector<8x32xf32>
    %228 = arith.addf %226, %227 : vector<8x32xf32>
    %229 = math.tanh %228 : vector<8x32xf32>
    %230 = arith.mulf %225, %229 : vector<8x32xf32>
    %231 = arith.mulf %230, %3 : vector<8x32xf32>
    %cst_43 = arith.constant dense<0.000000e+00> : vector<8xf32>
    %232 = vector.multi_reduction <add>, %231, %cst_43 [1] : vector<8x32xf32> to vector<8xf32>
    %233 = vector.shape_cast %232 : vector<8xf32> to vector<8x1xf32>
    %cst_44 = arith.constant 0.000000e+00 : f32
    %234 = vector.broadcast %cst_44 : f32 to vector<8x1xf32>
    %235 = arith.maximumf %233, %234 : vector<8x1xf32>
    %236 = math.exp %235 : vector<8x1xf32>
    %237 = arith.addf %207, %236 : vector<8x1xf32>
    %238 = vector.broadcast %236 : vector<8x1xf32> to vector<8x32xf32>
    %239 = arith.mulf %238, %230 : vector<8x32xf32>
    %240 = arith.addf %210, %239 : vector<8x32xf32>
    %241 = vector.extract_strided_slice %26 {offsets = [56, 0], sizes = [8, 128], strides = [1, 1]} : vector<64x128xf32> to vector<8x128xf32>
    %cst_45 = arith.constant dense<0.000000e+00> : vector<8x128xf32>
    %242 = tpu.matmul %230, %0, %cst_45 {dimension_numbers = #tpu.dot_dimension_numbers<[1], [0], [0], [1], [0, 0, 1, 1], [], []>} : vector<8x32xf32>, vector<32x128xf32>, vector<8x128xf32> -> vector<8x128xf32>
    %243 = arith.addf %241, %242 : vector<8x128xf32>
    %244 = arith.mulf %243, %14 : vector<8x128xf32>
    %245 = arith.negf %244 : vector<8x128xf32>
    %246 = math.exp %245 : vector<8x128xf32>
    %cst_46 = arith.constant 1.000000e+00 : f32
    %247 = vector.broadcast %cst_46 : f32 to vector<8x128xf32>
    %248 = arith.addf %247, %246 : vector<8x128xf32>
    %249 = arith.divf %247, %248 : vector<8x128xf32>
    %250 = arith.mulf %249, %14 : vector<8x128xf32>
    %251 = arith.addf %250, %19 : vector<8x128xf32>
    %252 = vector.extract_strided_slice %251 {offsets = [0, 0], sizes = [8, 32], strides = [1, 1]} : vector<8x128xf32> to vector<8x32xf32>
    %253 = vector.extract_strided_slice %251 {offsets = [0, 32], sizes = [8, 32], strides = [1, 1]} : vector<8x128xf32> to vector<8x32xf32>
    %254 = vector.extract_strided_slice %251 {offsets = [0, 64], sizes = [8, 32], strides = [1, 1]} : vector<8x128xf32> to vector<8x32xf32>
    %255 = vector.extract_strided_slice %251 {offsets = [0, 96], sizes = [8, 32], strides = [1, 1]} : vector<8x128xf32> to vector<8x32xf32>
    %256 = arith.mulf %253, %228 : vector<8x32xf32>
    %257 = arith.mulf %252, %254 : vector<8x32xf32>
    %258 = arith.addf %256, %257 : vector<8x32xf32>
    %259 = math.tanh %258 : vector<8x32xf32>
    %260 = arith.mulf %255, %259 : vector<8x32xf32>
    %261 = arith.mulf %260, %3 : vector<8x32xf32>
    %cst_47 = arith.constant dense<0.000000e+00> : vector<8xf32>
    %262 = vector.multi_reduction <add>, %261, %cst_47 [1] : vector<8x32xf32> to vector<8xf32>
    %263 = vector.shape_cast %262 : vector<8xf32> to vector<8x1xf32>
    %cst_48 = arith.constant 0.000000e+00 : f32
    %264 = vector.broadcast %cst_48 : f32 to vector<8x1xf32>
    %265 = arith.maximumf %263, %264 : vector<8x1xf32>
    %266 = math.exp %265 : vector<8x1xf32>
    %267 = arith.addf %237, %266 : vector<8x1xf32>
    %268 = vector.broadcast %266 : vector<8x1xf32> to vector<8x32xf32>
    %269 = arith.mulf %268, %260 : vector<8x32xf32>
    %270 = arith.addf %240, %269 : vector<8x32xf32>
    %271 = tpu.reciprocal %267 {approx = true} : vector<8x1xf32> -> vector<8x1xf32>
    %272 = vector.broadcast %271 : vector<8x1xf32> to vector<8x32xf32>
    %273 = arith.mulf %270, %272 : vector<8x32xf32>
    %c0_49 = arith.constant 0 : index
    %c0_50 = arith.constant 0 : index
    %274 = vector.load %arg5[%c0_49, %c0_50] : memref<32x16xf32, #tpu.memory_space<vmem>>, vector<32x16xf32>
    %cst_51 = arith.constant dense<0.000000e+00> : vector<8x16xf32>
    %275 = tpu.matmul %273, %274, %cst_51 {dimension_numbers = #tpu.dot_dimension_numbers<[1], [0], [0], [1], [0, 0, 1, 1], [], []>} : vector<8x32xf32>, vector<32x16xf32>, vector<8x16xf32> -> vector<8x16xf32>
    %c0_52 = arith.constant 0 : index
    %c0_53 = arith.constant 0 : index
    %276 = vector.load %arg6[%c0_52, %c0_53] : memref<1x16xf32, #tpu.memory_space<vmem>>, vector<1x16xf32>
    %277 = vector.broadcast %276 : vector<1x16xf32> to vector<8x16xf32>
    %278 = arith.addf %275, %277 : vector<8x16xf32>
    %cst_54 = arith.constant 0.000000e+00 : f32
    %279 = vector.broadcast %cst_54 : f32 to vector<8x16xf32>
    %280 = arith.maximumf %278, %279 : vector<8x16xf32>
    %c0_55 = arith.constant 0 : index
    %c0_56 = arith.constant 0 : index
    %281 = vector.load %arg7[%c0_55, %c0_56] : memref<16x128xf32, #tpu.memory_space<vmem>>, vector<16x128xf32>
    %cst_57 = arith.constant dense<0.000000e+00> : vector<8x128xf32>
    %282 = tpu.matmul %280, %281, %cst_57 {dimension_numbers = #tpu.dot_dimension_numbers<[1], [0], [0], [1], [0, 0, 1, 1], [], []>} : vector<8x16xf32>, vector<16x128xf32>, vector<8x128xf32> -> vector<8x128xf32>
    %c0_58 = arith.constant 0 : index
    %c0_59 = arith.constant 0 : index
    %283 = vector.load %arg8[%c0_58, %c0_59] : memref<1x128xf32, #tpu.memory_space<vmem>>, vector<1x128xf32>
    %284 = vector.broadcast %283 : vector<1x128xf32> to vector<8x128xf32>
    %285 = arith.addf %282, %284 : vector<8x128xf32>
    %c0_60 = arith.constant 0 : index
    %c0_61 = arith.constant 0 : index
    %286 = vector.load %arg9[%c0_60, %c0_61] : memref<8x128xf32, #tpu.memory_space<vmem>>, vector<8x128xf32>
    tpu.vector_store %arg9[%c0_60, %c0_61], %285 {strides = array<i32>} : memref<8x128xf32, #tpu.memory_space<vmem>>, vector<8x128xf32>,
    return
  }
}

</mosaic_0001>

<bundles_post_ra>
// kernel: bi_lstm_forward.1
= control target key start
LH: loop header
LB: loop body
LE: loop exit
PB: predicated region body
PF: predicated region fallthrough
CT: control target
= control target key end

     0   :  { %vm59_vm0 = vcmask 64512   ;;  %v932_v6 = vmov 0.0   ;;  %v39_v7 = vlaneseq  ;;  %v933_v13 = vmov 1.0   ;;  %s935_s21 = smov 32   ;;  %s936_s16 = smov 96   ;;  %s1267_s3 = inlined_call_operand.vmem [shape: f32[32,128], index: 3, kind: input, shape index: {}]   ;;  %s1268_s1 = inlined_call_operand.vmem [shape: f32[8,128], index: 1, kind: input, shape index: {}]   ;;  %s1269_s0 = inlined_call_operand.vmem [shape: f32[64,8], index: 0, kind: input, shape index: {}]   ;;  %s1270_s2 = inlined_call_operand.vmem [shape: f32[1,128], index: 2, kind: input, shape index: {}]   ;;  %s1271_s4 = inlined_call_operand.vmem [shape: f32[1,32], index: 4, kind: input, shape index: {}]   ;;  %s1272_s6 = inlined_call_operand.vmem [shape: f32[1,16], index: 6, kind: input, shape index: {}]   ;;  %s1273_s5 = inlined_call_operand.vmem [shape: f32[32,16], index: 5, kind: input, shape index: {}]   ;;  %s1274_s7 = inlined_call_operand.vmem [shape: f32[16,128], index: 7, kind: input, shape index: {}]   ;;  %s1275_s8 = inlined_call_operand.vmem [shape: f32[1,128], index: 8, kind: input, shape index: {}]   ;;  %s1276_s9 = inlined_call_operand.vmem [shape: f32[8,128], index: 9, kind: output, shape index: {}]  }
   0x1   :  { %v990_v0 = vld [vmem:[%s1267_s3 + $0x18] sm:$0xff]  ;;  %v995_v1 = vld [vmem:[%s1267_s3 + $0x10] sm:$0xff]  ;;  %v54_v2 = vld [vmem:[%s1268_s1] sm:$0xff]  ;;  %vm125_vm8 = vcmask 261120  }
   0x2   :  { %141 = vmatpush.msra.mxu1 %v990_v0  ;;  %99 = vmatpush.msra.mxu0 %v54_v2  ;;  %v46_v3 = vld [vmem:[%s1269_s0] sm:$0xff]  ;;  %v1007_v4 = vld [vmem:[%s1267_s3 + $0x8] sm:$0xff]  ;;  %v40_v8 = vand.u32 127, %v39_v7 }
   0x3   :  { %830 = vmatmul.msk.f32.vlgmr.msra.gmra.mxu0 %vm59_vm0, %v46_v3  ;;  %855 = vmatpush.msra.mxu2 %v54_v2  ;;  %v1015_v5 = vld [vmem:[%s1267_s3] sm:$0xff]  ;;  %v51_v40 = vld [vmem:[%s1269_s0 + $0x28] sm:$0xff] }
   0x4   :  { %142 = vmatpush.msra.mxu1 %v995_v1  ;;  %856 = vmatpush.msra.mxu3 %v54_v2  ;;  %v1037_v9 = vld [vmem:[%s1270_s2] ss:$0 sm:$0xff]  ;;  %vm41_vm1 = vcmp.ge.s32.totalorder %v40_v8, 64  ;;  %vm42_vm2 = vcmp.lt.s32.totalorder %v40_v8, 96  ;;  %s934_s2 = smov 64   ;;  %v47_v43 = vld [vmem:[%s1269_s0 + $0x8] sm:$0xff] }
   0x5   :  { %223 = vmatpush.msrb.mxu2 %v990_v0  ;;  %vm1039_vm3 = vmand %vm41_vm1, %vm42_vm2 }
   0x6   :  { %143 = vmatpush.msra.mxu1 %v1007_v4  ;;  %302 = vmatpush.msrb.mxu3 %v990_v0  ;;  %v1046_v14 = vsel %vm1039_vm3, 2.0, %v933_v13  ;;  %v1051_v30 = vsel %vm1039_vm3, -1.0, %v932_v6  ;;  %v52_v13 = vld [vmem:[%s1269_s0 + $0x30] sm:$0xff] }
   0x7   :  { %224 = vmatpush.msrb.mxu2 %v995_v1  ;;  %836 = vmatmul.msk.f32.vlgmr.msra.gmra.mxu3 %vm59_vm0, %v52_v13 }
   0x8   :  { %144 = vmatpush.msra.mxu1 %v1015_v5  ;;  %303 = vmatpush.msrb.mxu3 %v995_v1 }
   0x9   :  { %225 = vmatpush.msrb.mxu2 %v1007_v4  ;;  %145 = vmatmul.f32.vlgmr.msra.gmra.mxu1 %v932_v6 }
   0xa   :  { %381 = vmatpush.msrb.mxu1 %v990_v0  ;;  %304 = vmatpush.msrb.mxu3 %v1007_v4 }
   0xb   :  { %226 = vmatpush.msrb.mxu2 %v1015_v5  ;;  %831 = vmatmul.msk.f32.gmra.mxu0 %vm59_vm0, %v47_v43 }
   0xc   :  { %382 = vmatpush.msrb.mxu1 %v995_v1  ;;  %305 = vmatpush.msrb.mxu3 %v1015_v5 }
   0xd   :  { %835 = vmatmul.msk.f32.vlgmr.msra.gmra.mxu2 %vm59_vm0, %v51_v40 }
   0xe   :  { %383 = vmatpush.msrb.mxu1 %v1007_v4  ;;  %460 = vmatpush.msra.mxu2 %v990_v0 }
   0xf   :  { %539 = vmatpush.msra.mxu3 %v990_v0 }
  0x10   :  { %384 = vmatpush.msrb.mxu1 %v1015_v5  ;;  %461 = vmatpush.msra.mxu2 %v995_v1 }
  0x11   :  { %540 = vmatpush.msra.mxu3 %v995_v1 }
  0x12   :  { %618 = vmatpush.msra.mxu1 %v990_v0  ;;  %462 = vmatpush.msra.mxu2 %v1007_v4 }
  0x13   :  { %541 = vmatpush.msra.mxu3 %v1007_v4 }
  0x14   :  { %619 = vmatpush.msra.mxu1 %v995_v1  ;;  %463 = vmatpush.msra.mxu2 %v1015_v5 }
  0x15   :  { %542 = vmatpush.msra.mxu3 %v1015_v5 }
  0x16   :  { %620 = vmatpush.msra.mxu1 %v1007_v4 }
  0x18   :  { %621 = vmatpush.msra.mxu1 %v1015_v5 }
  0x80   :  { %v101_v10 = vpop.f32.mrf.mxu0 }
  0x81   :  { %v102_v12 = vadd.f32 %v1037_v9, %v101_v10 }
  0x86   :  { %v146_v15 = vpop.f32.mrf.mxu1 }
  0x87   :  { %v149_v16 = vadd.f32 %v146_v15, %v102_v12  ;;  %v53_v15 = vld [vmem:[%s1269_s0 + $0x38] sm:$0xff] }
  0x88   :  { %v104_v46 = vpop.f32.mrf.mxu0  ;;  %837 = vmatmul.msk.f32.gmra.mxu3 %vm59_vm0, %v53_v15 }
  0x89   :  { %v150_v17 = vmul.f32 %v149_v16, %v1046_v14  ;;  %v105_v47 = vadd.f32 %v1037_v9, %v104_v46 }
  0x8b   :  { %v838_v18 = vmul.f32 -1.442695, %v150_v17 }
  0x8d   :  { %866 = vpow2.f32 %v838_v18 }
  0x90   :  { %v1079_v45 = vpop.f32.mrf.mxu2 }
  0x93   :  { %v867_v19 = vpop.eup %866 }
  0x94   :  { %v154_v20 = vadd.f32 1.0, %v867_v19 }
  0x96   :  { %868 = vrcp.f32 %v154_v20  ;;  %v166_v24 = vand.u32 2147483648, %v154_v20  ;;  %v164_v26 = vand.u32 2147483647, %v154_v20  ;;  %vm160_vm5 = vweird.f32 %v154_v20 }
  0x98   :  { %v167_v28 = vor.u32 1.1754944e-38, %v166_v24  ;;  %vm165_vm7 = vcmp.eq.f32.partialorder %v164_v26, 8.507059e+37 }
  0x9c   :  { %v869_v21 = vpop.eup %868 }
  0x9d   :  { %v156_v22 = vmul.f32 %v869_v21, %v154_v20  ;;  %vm161_vm4 = vweird.f32 %v869_v21 }
  0x9e   :  { %vm162_vm6 = vmor %vm160_vm5, %vm161_vm4 }
  0x9f   :  { %v157_v23 = vsub.f32 1.0, %v156_v22 }
  0xa1   :  { %v158_v25 = vmul.f32 %v869_v21, %v157_v23 }
  0xa3   :  { %v159_v27 = vadd.f32 %v869_v21, %v158_v25 }
  0xa5   :  { %v163_v29 = vsel %vm162_vm6, %v869_v21, %v159_v27 }
  0xa6   :  { %v168_v31 = vsel %vm165_vm7, %v167_v28, %v163_v29 }
  0xa7   :  { %v170_v32 = vmul.f32 %v168_v31, %v1046_v14 }
  0xa9   :  { %v171_v33 = vadd.f32 %v170_v32, %v1051_v30 }
  0xab   :  { %174 = vrot.lane.b32.xlu0 %v171_v33, %s934_s2  ;;  %v172_v36 = vmul.f32 0.0, %v171_v33 }
 0x11d   :  { %v175_v34 = vpop.permute.xlu0 %174 }
 0x11e   :  { %v177_v35 = vmul.f32 %v175_v34, %v171_v33 }
 0x120   :  { %179 = vrot.lane.b32.xlu0 %v177_v35, %s935_s21 }
 0x192   :  { %v180_v37 = vpop.permute.xlu0 %179 }
 0x193   :  { %v182_v38 = vadd.f32 %v180_v37, %v172_v36 }
 0x195   :  { %870 = vtanh.f32 %v182_v38 }
 0x19b   :  { %v871_v39 = vpop.eup %870 }
 0x19c   :  { %185 = vrot.lane.b32.xlu1 %v871_v39, %s934_s2 }
 0x20e   :  { %v186_v41 = vpop.permute.xlu1 %185 }
 0x20f   :  { %v1066_v42 = vmul.f32 %v186_v41, %v171_v33 }
 0x211   :  { %207 = vrot.lane.b32.xlu1 %v1066_v42, %s935_s21 }
 0x283   :  { %v208_v44 = vpop.permute.xlu1 %207 }
 0x284   :  { %839 = vmatmul.msk.f32.vlgmr.msrb.gmra.mxu2 %vm125_vm8, %v208_v44 }
 0x285   :  { %697 = vmatpush.msrb.mxu2 %v990_v0  ;;  %v48_v0 = vld [vmem:[%s1269_s0 + $0x10] sm:$0xff] }
 0x286   :  { %832 = vmatmul.msk.f32.gmra.mxu0 %vm59_vm0, %v48_v0 }
 0x287   :  { %698 = vmatpush.msrb.mxu2 %v995_v1 }
 0x289   :  { %699 = vmatpush.msrb.mxu2 %v1007_v4  ;;  %v1109_v4 = vpop.f32.mrf.mxu3 }
 0x28b   :  { %700 = vmatpush.msrb.mxu2 %v1015_v5 }
 0x291   :  { %v1111_v5 = vpop.f32.mrf.mxu3 }
 0x303   :  { %v107_v18 = vpop.f32.mrf.mxu0 }
 0x304   :  { %v108_v19 = vadd.f32 %v1037_v9, %v107_v18 }
 0x307   :  { %v228_v48 = vpop.f32.mrf.mxu2 }
 0x308   :  { %v231_v49 = vadd.f32 %v228_v48, %v105_v47  ;;  %v49_v47 = vld [vmem:[%s1269_s0 + $0x18] sm:$0xff] }
 0x309   :  { %833 = vmatmul.msk.f32.gmra.mxu0 %vm59_vm0, %v49_v47 }
 0x30a   :  { %v232_v50 = vmul.f32 %v231_v49, %v1046_v14 }
 0x30c   :  { %v840_v51 = vmul.f32 -1.442695, %v232_v50 }
 0x30e   :  { %872 = vpow2.f32 %v840_v51 }
 0x314   :  { %v873_v52 = vpop.eup %872 }
 0x315   :  { %v236_v53 = vadd.f32 1.0, %v873_v52 }
 0x317   :  { %874 = vrcp.f32 %v236_v53  ;;  %v248_v57 = vand.u32 2147483648, %v236_v53  ;;  %v246_v59 = vand.u32 2147483647, %v236_v53  ;;  %vm242_vm10 = vweird.f32 %v236_v53 }
 0x319   :  { %v249_v61 = vor.u32 1.1754944e-38, %v248_v57  ;;  %vm247_vm12 = vcmp.eq.f32.partialorder %v246_v59, 8.507059e+37 }
 0x31d   :  { %v875_v54 = vpop.eup %874 }
 0x31e   :  { %v238_v55 = vmul.f32 %v875_v54, %v236_v53  ;;  %vm243_vm9 = vweird.f32 %v875_v54 }
 0x31f   :  { %vm244_vm11 = vmor %vm242_vm10, %vm243_vm9 }
 0x320   :  { %v239_v56 = vsub.f32 1.0, %v238_v55 }
 0x322   :  { %v240_v58 = vmul.f32 %v875_v54, %v239_v56 }
 0x324   :  { %v241_v60 = vadd.f32 %v875_v54, %v240_v58 }
 0x326   :  { %v245_v62 = vsel %vm244_vm11, %v875_v54, %v241_v60 }
 0x327   :  { %v250_v63 = vsel %vm247_vm12, %v249_v61, %v245_v62 }
 0x328   :  { %v252_v2 = vmul.f32 %v250_v63, %v1046_v14 }
 0x32a   :  { %v253_v3 = vadd.f32 %v252_v2, %v1051_v30 }
 0x32c   :  { %256 = vrot.lane.b32.xlu2 %v253_v3, %s934_s2  ;;  %v254_v8 = vmul.f32 %v253_v3, %v182_v38 }
 0x386   :  { %v257_v6 = vpop.permute.xlu2 %256  ;;  %v110_v51 = vpop.f32.mrf.mxu0 }
 0x387   :  { %v259_v7 = vmul.f32 %v257_v6, %v253_v3  ;;  %v111_v52 = vadd.f32 %v1037_v9, %v110_v51 }
 0x389   :  { %261 = vrot.lane.b32.xlu2 %v259_v7, %s935_s21 }
 0x3e3   :  { %v262_v10 = vpop.permute.xlu2 %261 }
 0x3e4   :  { %v264_v11 = vadd.f32 %v262_v10, %v254_v8 }
 0x3e6   :  { %876 = vtanh.f32 %v264_v11 }
 0x3ec   :  { %v877_v12 = vpop.eup %876 }
 0x3ed   :  { %267 = vrot.lane.b32.xlu0 %v877_v12, %s934_s2 }
 0x45f   :  { %v268_v16 = vpop.permute.xlu0 %267 }
 0x460   :  { %v1100_v17 = vmul.f32 %v268_v16, %v253_v3 }
 0x462   :  { %286 = vrot.lane.b32.xlu1 %v1100_v17, %s935_s21 }
 0x4d4   :  { %v287_v1 = vpop.permute.xlu1 %286 }
 0x4d5   :  { %841 = vmatmul.msk.f32.vlgmr.msrb.gmra.mxu3 %vm125_vm8, %v287_v1 }
 0x558   :  { %v307_v20 = vpop.f32.mrf.mxu3 }
 0x559   :  { %v310_v21 = vadd.f32 %v307_v20, %v108_v19  ;;  %v50_v20 = vld [vmem:[%s1269_s0 + $0x20] sm:$0xff] }
 0x55a   :  { %834 = vmatmul.msk.f32.gmra.mxu0 %vm59_vm0, %v50_v20 }
 0x55b   :  { %v311_v22 = vmul.f32 %v310_v21, %v1046_v14 }
 0x55d   :  { %v842_v23 = vmul.f32 -1.442695, %v311_v22 }
 0x55f   :  { %878 = vpow2.f32 %v842_v23 }
 0x565   :  { %v879_v24 = vpop.eup %878 }
 0x566   :  { %v315_v25 = vadd.f32 1.0, %v879_v24 }
 0x568   :  { %880 = vrcp.f32 %v315_v25  ;;  %v327_v29 = vand.u32 2147483648, %v315_v25  ;;  %v325_v32 = vand.u32 2147483647, %v315_v25  ;;  %vm321_vm14 = vweird.f32 %v315_v25 }
 0x56a   :  { %v328_v34 = vor.u32 1.1754944e-38, %v327_v29  ;;  %vm326_vm1 = vcmp.eq.f32.partialorder %v325_v32, 8.507059e+37 }
 0x56e   :  { %v881_v26 = vpop.eup %880 }
 0x56f   :  { %v317_v27 = vmul.f32 %v881_v26, %v315_v25  ;;  %vm322_vm13 = vweird.f32 %v881_v26 }
 0x570   :  { %vm323_vm15 = vmor %vm321_vm14, %vm322_vm13 }
 0x571   :  { %v318_v28 = vsub.f32 1.0, %v317_v27 }
 0x573   :  { %v319_v31 = vmul.f32 %v881_v26, %v318_v28 }
 0x575   :  { %v320_v33 = vadd.f32 %v881_v26, %v319_v31 }
 0x577   :  { %v324_v35 = vsel %vm323_vm15, %v881_v26, %v320_v33 }
 0x578   :  { %v329_v36 = vsel %vm326_vm1, %v328_v34, %v324_v35 }
 0x579   :  { %v331_v37 = vmul.f32 %v329_v36, %v1046_v14 }
 0x57b   :  { %v332_v38 = vadd.f32 %v331_v37, %v1051_v30 }
 0x57d   :  { %335 = vrot.lane.b32.xlu2 %v332_v38, %s934_s2  ;;  %v333_v41 = vmul.f32 %v332_v38, %v264_v11 }
 0x5d7   :  { %v336_v39 = vpop.permute.xlu2 %335  ;;  %v113_v22 = vpop.f32.mrf.mxu0 }
 0x5d8   :  { %v338_v40 = vmul.f32 %v336_v39, %v332_v38  ;;  %v114_v23 = vadd.f32 %v1037_v9, %v113_v22 }
 0x5da   :  { %340 = vrot.lane.b32.xlu0 %v338_v40, %s935_s21 }
 0x64c   :  { %v341_v43 = vpop.permute.xlu0 %340 }
 0x64d   :  { %v343_v44 = vadd.f32 %v341_v43, %v333_v41 }
 0x64f   :  { %882 = vtanh.f32 %v343_v44 }
 0x655   :  { %v883_v46 = vpop.eup %882 }
 0x656   :  { %346 = vrot.lane.b32.xlu1 %v883_v46, %s934_s2 }
 0x6c8   :  { %v347_v48 = vpop.permute.xlu1 %346 }
 0x6c9   :  { %v1124_v49 = vmul.f32 %v347_v48, %v332_v38 }
 0x6cb   :  { %365 = vrot.lane.b32.xlu2 %v1124_v49, %s935_s21 }
 0x725   :  { %v366_v50 = vpop.permute.xlu2 %365 }
 0x726   :  { %843 = vmatmul.msk.f32.vlgmr.msrb.gmra.mxu1 %vm125_vm8, %v366_v50 }
 0x7a3   :  { %v386_v53 = vpop.f32.mrf.mxu1 }
 0x7a4   :  { %v389_v54 = vadd.f32 %v386_v53, %v111_v52 }
 0x7a6   :  { %v390_v55 = vmul.f32 %v389_v54, %v1046_v14 }
 0x7a8   :  { %v844_v56 = vmul.f32 -1.442695, %v390_v55  ;;  %v117_v55 = vadd.f32 %v1037_v9, %v1079_v45 }
 0x7aa   :  { %884 = vpow2.f32 %v844_v56 }
 0x7b0   :  { %v885_v57 = vpop.eup %884 }
 0x7b1   :  { %v394_v58 = vadd.f32 1.0, %v885_v57 }
 0x7b3   :  { %886 = vrcp.f32 %v394_v58  ;;  %v406_v62 = vand.u32 2147483648, %v394_v58  ;;  %v404_v2 = vand.u32 2147483647, %v394_v58  ;;  %vm400_vm3 = vweird.f32 %v394_v58 }
 0x7b5   :  { %v407_v6 = vor.u32 1.1754944e-38, %v406_v62  ;;  %vm405_vm5 = vcmp.eq.f32.partialorder %v404_v2, 8.507059e+37 }
 0x7b9   :  { %v887_v59 = vpop.eup %886 }
 0x7ba   :  { %v396_v60 = vmul.f32 %v887_v59, %v394_v58  ;;  %vm401_vm2 = vweird.f32 %v887_v59 }
 0x7bb   :  { %vm402_vm4 = vmor %vm400_vm3, %vm401_vm2 }
 0x7bc   :  { %v397_v61 = vsub.f32 1.0, %v396_v60 }
 0x7be   :  { %v398_v63 = vmul.f32 %v887_v59, %v397_v61 }
 0x7c0   :  { %v399_v3 = vadd.f32 %v887_v59, %v398_v63 }
 0x7c2   :  { %v403_v7 = vsel %vm402_vm4, %v887_v59, %v399_v3 }
 0x7c3   :  { %v408_v8 = vsel %vm405_vm5, %v407_v6, %v403_v7 }
 0x7c4   :  { %v410_v10 = vmul.f32 %v408_v8, %v1046_v14 }
 0x7c6   :  { %v411_v11 = vadd.f32 %v410_v10, %v1051_v30 }
 0x7c8   :  { %414 = vrot.lane.b32.xlu0 %v411_v11, %s934_s2  ;;  %v412_v15 = vmul.f32 %v411_v11, %v343_v44 }
 0x83a   :  { %v415_v12 = vpop.permute.xlu0 %414 }
 0x83b   :  { %v417_v13 = vmul.f32 %v415_v12, %v411_v11 }
 0x83d   :  { %419 = vrot.lane.b32.xlu1 %v417_v13, %s935_s21 }
 0x8af   :  { %v420_v16 = vpop.permute.xlu1 %419 }
 0x8b0   :  { %v422_v0 = vadd.f32 %v420_v16, %v412_v15 }
 0x8b2   :  { %888 = vtanh.f32 %v422_v0 }
 0x8b8   :  { %v889_v1 = vpop.eup %888 }
 0x8b9   :  { %425 = vrot.lane.b32.xlu2 %v889_v1, %s934_s2 }
 0x913   :  { %v426_v18 = vpop.permute.xlu2 %425 }
 0x914   :  { %v1136_v19 = vmul.f32 %v426_v18, %v411_v11 }
 0x916   :  { %444 = vrot.lane.b32.xlu0 %v1136_v19, %s935_s21 }
 0x988   :  { %v445_v21 = vpop.permute.xlu0 %444 }
 0x989   :  { %845 = vmatmul.msk.f32.vlgmr.msra.gmra.mxu2 %vm125_vm8, %v445_v21 }
 0xa0c   :  { %v465_v24 = vpop.f32.mrf.mxu2 }
 0xa0d   :  { %v468_v25 = vadd.f32 %v465_v24, %v114_v23  ;;  %v120_v24 = vadd.f32 %v1037_v9, %v1109_v4 }
 0xa0f   :  { %v469_v26 = vmul.f32 %v468_v25, %v1046_v14 }
 0xa11   :  { %v846_v27 = vmul.f32 -1.442695, %v469_v26 }
 0xa13   :  { %890 = vpow2.f32 %v846_v27 }
 0xa19   :  { %v891_v28 = vpop.eup %890 }
 0xa1a   :  { %v473_v29 = vadd.f32 1.0, %v891_v28 }
 0xa1c   :  { %892 = vrcp.f32 %v473_v29  ;;  %v485_v34 = vand.u32 2147483648, %v473_v29  ;;  %v483_v36 = vand.u32 2147483647, %v473_v29  ;;  %vm479_vm6 = vweird.f32 %v473_v29 }
 0xa1e   :  { %v486_v38 = vor.u32 1.1754944e-38, %v485_v34  ;;  %vm484_vm9 = vcmp.eq.f32.partialorder %v483_v36, 8.507059e+37 }
 0xa22   :  { %v893_v31 = vpop.eup %892 }
 0xa23   :  { %v475_v32 = vmul.f32 %v893_v31, %v473_v29  ;;  %vm480_vm0 = vweird.f32 %v893_v31 }
 0xa24   :  { %vm481_vm7 = vmor %vm479_vm6, %vm480_vm0  ;;  %vm801_vm6 = vcmask 130048  }
 0xa25   :  { %v476_v33 = vsub.f32 1.0, %v475_v32 }
 0xa27   :  { %v477_v35 = vmul.f32 %v893_v31, %v476_v33 }
 0xa29   :  { %v478_v37 = vadd.f32 %v893_v31, %v477_v35 }
 0xa2b   :  { %v482_v39 = vsel %vm481_vm7, %v893_v31, %v478_v37 }
 0xa2c   :  { %v487_v40 = vsel %vm484_vm9, %v486_v38, %v482_v39 }
 0xa2d   :  { %v489_v41 = vmul.f32 %v487_v40, %v1046_v14 }
 0xa2f   :  { %v490_v43 = vadd.f32 %v489_v41, %v1051_v30 }
 0xa31   :  { %493 = vrot.lane.b32.xlu1 %v490_v43, %s934_s2  ;;  %v491_v47 = vmul.f32 %v490_v43, %v422_v0 }
 0xaa3   :  { %v494_v44 = vpop.permute.xlu1 %493 }
 0xaa4   :  { %v496_v46 = vmul.f32 %v494_v44, %v490_v43 }
 0xaa6   :  { %498 = vrot.lane.b32.xlu2 %v496_v46, %s935_s21 }
 0xb00   :  { %v499_v48 = vpop.permute.xlu2 %498 }
 0xb01   :  { %v501_v50 = vadd.f32 %v499_v48, %v491_v47 }
 0xb03   :  { %894 = vtanh.f32 %v501_v50 }
 0xb09   :  { %v895_v51 = vpop.eup %894 }
 0xb0a   :  { %504 = vrot.lane.b32.xlu0 %v895_v51, %s934_s2 }
 0xb7c   :  { %v505_v52 = vpop.permute.xlu0 %504 }
 0xb7d   :  { %v1152_v53 = vmul.f32 %v505_v52, %v490_v43 }
 0xb7f   :  { %523 = vrot.lane.b32.xlu1 %v1152_v53, %s935_s21 }
 0xbf1   :  { %v524_v54 = vpop.permute.xlu1 %523 }
 0xbf2   :  { %847 = vmatmul.msk.f32.vlgmr.msra.gmra.mxu3 %vm125_vm8, %v524_v54 }
 0xc75   :  { %v544_v56 = vpop.f32.mrf.mxu3 }
 0xc76   :  { %v547_v57 = vadd.f32 %v544_v56, %v117_v55  ;;  %v863_v55 = vld [vmem:[%s1271_s4] ss:$0 sm:$0xff] }
 0xc78   :  { %v548_v58 = vmul.f32 %v547_v57, %v1046_v14 }
 0xc7a   :  { %v848_v59 = vmul.f32 -1.442695, %v548_v58 }
 0xc7c   :  { %896 = vpow2.f32 %v848_v59 }
 0xc82   :  { %v897_v60 = vpop.eup %896 }
 0xc83   :  { %v552_v61 = vadd.f32 1.0, %v897_v60  ;;  %v123_v60 = vadd.f32 %v1037_v9, %v1111_v5 }
 0xc85   :  { %898 = vrcp.f32 %v552_v61  ;;  %v564_v3 = vand.u32 2147483648, %v552_v61  ;;  %v562_v7 = vand.u32 2147483647, %v552_v61  ;;  %vm558_vm11 = vweird.f32 %v552_v61 }
 0xc87   :  { %v565_v45 = vor.u32 1.1754944e-38, %v564_v3  ;;  %vm563_vm13 = vcmp.eq.f32.partialorder %v562_v7, 8.507059e+37 }
 0xc8b   :  { %v899_v62 = vpop.eup %898 }
 0xc8c   :  { %v554_v63 = vmul.f32 %v899_v62, %v552_v61  ;;  %vm559_vm10 = vweird.f32 %v899_v62 }
 0xc8d   :  { %vm560_vm12 = vmor %vm558_vm11, %vm559_vm10 }
 0xc8e   :  { %v555_v2 = vsub.f32 1.0, %v554_v63 }
 0xc90   :  { %v556_v6 = vmul.f32 %v899_v62, %v555_v2 }
 0xc92   :  { %v557_v8 = vadd.f32 %v899_v62, %v556_v6 }
 0xc94   :  { %v561_v10 = vsel %vm560_vm12, %v899_v62, %v557_v8 }
 0xc95   :  { %v566_v11 = vsel %vm563_vm13, %v565_v45, %v561_v10 }
 0xc96   :  { %v568_v12 = vmul.f32 %v566_v11, %v1046_v14 }
 0xc98   :  { %v569_v13 = vadd.f32 %v568_v12, %v1051_v30 }
 0xc9a   :  { %572 = vrot.lane.b32.xlu2 %v569_v13, %s934_s2  ;;  %v570_v0 = vmul.f32 %v569_v13, %v501_v50 }
 0xcf4   :  { %v573_v15 = vpop.permute.xlu2 %572 }
 0xcf5   :  { %v575_v16 = vmul.f32 %v573_v15, %v569_v13 }
 0xcf7   :  { %577 = vrot.lane.b32.xlu0 %v575_v16, %s935_s21 }
 0xd69   :  { %v578_v1 = vpop.permute.xlu0 %577 }
 0xd6a   :  { %v580_v18 = vadd.f32 %v578_v1, %v570_v0 }
 0xd6c   :  { %900 = vtanh.f32 %v580_v18 }
 0xd72   :  { %v901_v20 = vpop.eup %900 }
 0xd73   :  { %583 = vrot.lane.b32.xlu1 %v901_v20, %s934_s2 }
 0xde5   :  { %v584_v21 = vpop.permute.xlu1 %583 }
 0xde6   :  { %v1165_v22 = vmul.f32 %v584_v21, %v569_v13 }
 0xde8   :  { %602 = vrot.lane.b32.xlu2 %v1165_v22, %s935_s21 }
 0xe42   :  { %v603_v23 = vpop.permute.xlu2 %602 }
 0xe43   :  { %849 = vmatmul.msk.f32.vlgmr.msra.gmra.mxu1 %vm125_vm8, %v603_v23 }
 0xec0   :  { %v623_v25 = vpop.f32.mrf.mxu1 }
 0xec1   :  { %v626_v26 = vadd.f32 %v623_v25, %v120_v24 }
 0xec3   :  { %v627_v27 = vmul.f32 %v626_v26, %v1046_v14 }
 0xec5   :  { %v850_v28 = vmul.f32 -1.442695, %v627_v27 }
 0xec7   :  { %902 = vpow2.f32 %v850_v28 }
 0xecd   :  { %v903_v29 = vpop.eup %902 }
 0xece   :  { %v631_v31 = vadd.f32 1.0, %v903_v29 }
 0xed0   :  { %904 = vrcp.f32 %v631_v31  ;;  %v643_v35 = vand.u32 2147483648, %v631_v31  ;;  %v641_v37 = vand.u32 2147483647, %v631_v31  ;;  %vm637_vm15 = vweird.f32 %v631_v31 }
 0xed2   :  { %v644_v4 = vor.u32 1.1754944e-38, %v643_v35  ;;  %vm642_vm2 = vcmp.eq.f32.partialorder %v641_v37, 8.507059e+37 }
 0xed6   :  { %v905_v32 = vpop.eup %904 }
 0xed7   :  { %v633_v33 = vmul.f32 %v905_v32, %v631_v31  ;;  %vm638_vm14 = vweird.f32 %v905_v32 }
 0xed8   :  { %vm639_vm1 = vmor %vm637_vm15, %vm638_vm14 }
 0xed9   :  { %v634_v34 = vsub.f32 1.0, %v633_v33 }
 0xedb   :  { %v635_v36 = vmul.f32 %v905_v32, %v634_v34 }
 0xedd   :  { %v636_v38 = vadd.f32 %v905_v32, %v635_v36 }
 0xedf   :  { %v640_v39 = vsel %vm639_vm1, %v905_v32, %v636_v38 }
 0xee0   :  { %v645_v40 = vsel %vm642_vm2, %v644_v4, %v640_v39 }
 0xee1   :  { %v647_v41 = vmul.f32 %v645_v40, %v1046_v14 }
 0xee3   :  { %v648_v43 = vadd.f32 %v647_v41, %v1051_v30 }
 0xee5   :  { %651 = vrot.lane.b32.xlu0 %v648_v43, %s934_s2  ;;  %v649_v47 = vmul.f32 %v648_v43, %v580_v18 }
 0xf57   :  { %v652_v44 = vpop.permute.xlu0 %651 }
 0xf58   :  { %v654_v46 = vmul.f32 %v652_v44, %v648_v43 }
 0xf5a   :  { %656 = vrot.lane.b32.xlu1 %v654_v46, %s935_s21 }
 0xfcc   :  { %v657_v48 = vpop.permute.xlu1 %656 }
 0xfcd   :  { %v659_v50 = vadd.f32 %v657_v48, %v649_v47 }
 0xfcf   :  { %906 = vtanh.f32 %v659_v50 }
 0xfd5   :  { %v907_v51 = vpop.eup %906 }
 0xfd6   :  { %662 = vrot.lane.b32.xlu2 %v907_v51, %s934_s2 }
0x1030   :  { %v663_v52 = vpop.permute.xlu2 %662 }
0x1031   :  { %v1178_v54 = vmul.f32 %v663_v52, %v648_v43 }
0x1033   :  { %681 = vrot.lane.b32.xlu0 %v1178_v54, %s935_s21 }
0x103b   :  { %189 = vrot.lane.b32.xlu0 %v863_v55, %s936_s16 }
0x10a5   :  { %v682_v56 = vpop.permute.xlu0 %681 }
0x10a6   :  { %851 = vmatmul.msk.f32.vlgmr.msrb.gmra.mxu2 %vm125_vm8, %v682_v56 }
0x10ad   :  { %v1186_v57 = vpop.permute.xlu0 %189 }
0x10ae   :  { %v271_v58 = vmul.f32 %v1100_v17, %v1186_v57  ;;  %v508_v59 = vmul.f32 %v1152_v53, %v1186_v57  ;;  %v192_v20 = vmul.f32 %v1186_v57, %v1066_v42  ;;  %v429_v21 = vmul.f32 %v1136_v19, %v1186_v57 }
0x10af   :  { %v350_v31 = vmul.f32 %v1124_v49, %v1186_v57  ;;  %v587_v33 = vmul.f32 %v1165_v22, %v1186_v57 }
0x10b0   :  { %273 = vrot.lane.b32.xlu0 %v271_v58, %s935_s21 }
0x10b8   :  { %510 = vrot.lane.b32.xlu0 %v508_v59, %s935_s21 }
0x1129   :  { %v702_v61 = vpop.f32.mrf.mxu2 }
0x112a   :  { %v705_v62 = vadd.f32 %v702_v61, %v123_v60 }
0x112c   :  { %v706_v63 = vmul.f32 %v705_v62, %v1046_v14 }
0x112e   :  { %v852_v2 = vmul.f32 -1.442695, %v706_v63 }
0x1130   :  { %908 = vpow2.f32 %v852_v2 }
0x1136   :  { %v909_v3 = vpop.eup %908 }
0x1137   :  { %v710_v6 = vadd.f32 1.0, %v909_v3 }
0x1139   :  { %910 = vrcp.f32 %v710_v6  ;;  %v722_v10 = vand.u32 2147483648, %v710_v6  ;;  %v720_v12 = vand.u32 2147483647, %v710_v6  ;;  %vm716_vm4 = vweird.f32 %v710_v6 }
0x113b   :  { %v723_v9 = vor.u32 1.1754944e-38, %v722_v10  ;;  %vm721_vm0 = vcmp.eq.f32.partialorder %v720_v12, 8.507059e+37 }
0x113f   :  { %v911_v7 = vpop.eup %910 }
0x1140   :  { %v712_v8 = vmul.f32 %v911_v7, %v710_v6  ;;  %vm717_vm3 = vweird.f32 %v911_v7 }
0x1141   :  { %vm718_vm5 = vmor %vm716_vm4, %vm717_vm3 }
0x1142   :  { %v713_v45 = vsub.f32 1.0, %v712_v8 }
0x1144   :  { %v714_v11 = vmul.f32 %v911_v7, %v713_v45 }
0x1146   :  { %v715_v13 = vadd.f32 %v911_v7, %v714_v11 }
0x1148   :  { %v719_v5 = vsel %vm718_vm5, %v911_v7, %v715_v13  ;;  %v764_v13 = vld [vmem:[%s1273_s5 + $0x18] sm:$0xff] }
0x1149   :  { %v724_v15 = vsel %vm721_vm0, %v723_v9, %v719_v5  ;;  %v763_v9 = vld [vmem:[%s1273_s5 + $0x10] sm:$0xff]  ;;  %786 = vmatpush.msrb.mxu3 %v764_v13 }
0x114a   :  { %v726_v16 = vmul.f32 %v724_v15, %v1046_v14  ;;  %v666_v14 = vmul.f32 %v1178_v54, %v1186_v57 }
0x114b   :  { %787 = vmatpush.msrb.mxu3 %v763_v9 }
0x114c   :  { %v727_v0 = vadd.f32 %v726_v16, %v1051_v30  ;;  %v274_v30 = vpop.permute.xlu0 %273  ;;  %v762_v16 = vld [vmem:[%s1273_s5 + $0x8] sm:$0xff] }
0x114d   :  { %v276_v23 = vsel %vm125_vm8, %v274_v30, 0.0  ;;  %788 = vmatpush.msrb.mxu3 %v762_v16 }
0x114e   :  { %730 = vrot.lane.b32.xlu1 %v727_v0, %s934_s2  ;;  %v728_v24 = vmul.f32 %v727_v0, %v659_v50 }
0x1154   :  { %v511_v35 = vpop.permute.xlu0 %510 }
0x1155   :  { %v513_v36 = vsel %vm125_vm8, %v511_v35, 0.0 }
0x11c0   :  { %v731_v1 = vpop.permute.xlu1 %730 }
0x11c1   :  { %v733_v18 = vmul.f32 %v731_v1, %v727_v0 }
0x11c3   :  { %735 = vrot.lane.b32.xlu2 %v733_v18, %s935_s21 }
0x11cb   :  { %194 = vrot.lane.b32.xlu2 %v192_v20, %s935_s21  ;;  %v761_v20 = vld [vmem:[%s1273_s5] sm:$0xff] }
0x11cc   :  { %789 = vmatpush.msrb.mxu3 %v761_v20 }
0x11d3   :  { %431 = vrot.lane.b32.xlu2 %v429_v21, %s935_s21 }
0x11db   :  { %668 = vrot.lane.b32.xlu2 %v666_v14, %s935_s21 }
0x1204   :  { %277 = vadd.xlane.f32.xlu2 %v276_v23 }
0x121d   :  { %v736_v25 = vpop.permute.xlu2 %735 }
0x121e   :  { %v738_v26 = vadd.f32 %v736_v25, %v728_v24 }
0x1220   :  { %912 = vtanh.f32 %v738_v26 }
0x1225   :  { %v195_v27 = vpop.permute.xlu2 %194 }
0x1226   :  { %v913_v28 = vpop.eup %912  ;;  %v197_v34 = vsel %vm125_vm8, %v195_v27, 0.0 }
0x1227   :  { %741 = vrot.lane.b32.xlu1 %v913_v28, %s934_s2 }
0x122d   :  { %v432_v29 = vpop.permute.xlu2 %431 }
0x122e   :  { %v434_v32 = vsel %vm125_vm8, %v432_v29, 0.0 }
0x122f   :  { %352 = vrot.lane.b32.xlu1 %v350_v31, %s935_s21  ;;  %435 = vadd.xlane.f32.xlu2 %v434_v32 }
0x1235   :  { %v669_v44 = vpop.permute.xlu2 %668 }
0x1236   :  { %v671_v46 = vsel %vm125_vm8, %v669_v44, 0.0 }
0x1237   :  { %589 = vrot.lane.b32.xlu1 %v587_v33, %s935_s21 }
0x1261   :  { %198 = vadd.xlane.f32.xlu1 %v197_v34 }
0x1269   :  { %514 = vadd.xlane.f32.xlu1 %v513_v36 }
0x1277   :  { %v278_v50 = vpop.xlane.xlu2 %277 }
0x1278   :  { %v279_v56 = vmax.f32 %v278_v50, 0.0 }
0x127a   :  { %v280_v59 = vmul.f32 1.442695, %v279_v56 }
0x1299   :  { %v742_v37 = vpop.permute.xlu1 %741 }
0x129a   :  { %v1221_v38 = vmul.f32 %v742_v37, %v727_v0 }
0x129c   :  { %v745_v4 = vmul.f32 %v1221_v38, %v1186_v57 }
0x129e   :  { %747 = vrot.lane.b32.xlu0 %v745_v4, %s935_s21 }
0x12a1   :  { %v353_v39 = vpop.permute.xlu1 %352 }
0x12a2   :  { %v355_v43 = vsel %vm125_vm8, %v353_v39, 0.0  ;;  %v436_v60 = vpop.xlane.xlu2 %435 }
0x12a3   :  { %v437_v62 = vmax.f32 %v436_v60, 0.0 }
0x12a5   :  { %v438_v2 = vmul.f32 1.442695, %v437_v62 }
0x12a9   :  { %v590_v40 = vpop.permute.xlu1 %589 }
0x12aa   :  { %v592_v41 = vsel %vm125_vm8, %v590_v40, 0.0 }
0x12ab   :  { %593 = vadd.xlane.f32.xlu2 %v592_v41 }
0x12c8   :  { %356 = vadd.xlane.f32.xlu0 %v355_v43 }
0x12d0   :  { %672 = vadd.xlane.f32.xlu0 %v671_v46 }
0x12d4   :  { %v199_v51 = vpop.xlane.xlu1 %198 }
0x12d5   :  { %v200_v55 = vmax.f32 %v199_v51, 0.0 }
0x12d7   :  { %v201_v58 = vmul.f32 1.442695, %v200_v55  ;;  %v865_v55 = vld [vmem:[%s1275_s8] ss:$0 sm:$0xff] }
0x12d9   :  { %914 = vpow2.f32 %v201_v58 }
0x12da   :  { %916 = vpow2.f32 %v280_v59 }
0x12dc   :  { %v515_v63 = vpop.xlane.xlu1 %514 }
0x12dd   :  { %v516_v3 = vmax.f32 %v515_v63, 0.0 }
0x12df   :  { %v915_v7 = vpop.eup %914  ;;  %v517_v11 = vmul.f32 1.442695, %v516_v3 }
0x12e0   :  { %v917_v8 = vpop.eup %916  ;;  %v204_v1 = vmul.f32 %v915_v7, %v1066_v42 }
0x12e1   :  { %v282_v5 = vadd.f32 %v917_v8, %v915_v7  ;;  %v283_v14 = vmul.f32 %v917_v8, %v1100_v17 }
0x12e3   :  { %v284_v25 = vadd.f32 %v283_v14, %v204_v1 }
0x1310   :  { %v748_v47 = vpop.permute.xlu0 %747 }
0x1311   :  { %v750_v48 = vsel %vm125_vm8, %v748_v47, 0.0 }
0x1312   :  { %751 = vadd.xlane.f32.xlu1 %v750_v48 }
0x131e   :  { %v594_v6 = vpop.xlane.xlu2 %593 }
0x131f   :  { %v595_v12 = vmax.f32 %v594_v6, 0.0 }
0x1321   :  { %v596_v18 = vmul.f32 1.442695, %v595_v12 }
0x133b   :  { %v357_v52 = vpop.xlane.xlu0 %356 }
0x133c   :  { %v358_v57 = vmax.f32 %v357_v52, 0.0 }
0x133e   :  { %v359_v61 = vmul.f32 1.442695, %v358_v57 }
0x1340   :  { %918 = vpow2.f32 %v359_v61 }
0x1341   :  { %920 = vpow2.f32 %v438_v2 }
0x1342   :  { %922 = vpow2.f32 %v517_v11 }
0x1343   :  { %v673_v45 = vpop.xlane.xlu0 %672  ;;  %924 = vpow2.f32 %v596_v18 }
0x1344   :  { %v674_v15 = vmax.f32 %v673_v45, 0.0 }
0x1346   :  { %v919_v10 = vpop.eup %918  ;;  %v675_v23 = vmul.f32 1.442695, %v674_v15 }
0x1347   :  { %v361_v0 = vadd.f32 %v919_v10, %v282_v5  ;;  %v921_v21 = vpop.eup %920  ;;  %v362_v30 = vmul.f32 %v919_v10, %v1124_v49 }
0x1348   :  { %v923_v27 = vpop.eup %922  ;;  %926 = vpow2.f32 %v675_v23  ;;  %v441_v31 = vmul.f32 %v921_v21, %v1136_v19 }
0x1349   :  { %v440_v24 = vadd.f32 %v921_v21, %v361_v0  ;;  %v363_v42 = vadd.f32 %v362_v30, %v284_v25  ;;  %v925_v33 = vpop.eup %924  ;;  %v520_v49 = vmul.f32 %v923_v27, %v1152_v53  ;;  %v796_v53 = vld [vmem:[%s1274_s7 + $0x8] sm:$0xff] }
0x134a   :  { %v599_v39 = vmul.f32 %v925_v33, %v1165_v22  ;;  %819 = vmatpush.msrb.mxu1 %v796_v53  ;;  %v795_v22 = vld [vmem:[%s1274_s7] sm:$0xff] }
0x134b   :  { %v519_v29 = vadd.f32 %v923_v27, %v440_v24  ;;  %v442_v34 = vadd.f32 %v441_v31, %v363_v42 }
0x134c   :  { %820 = vmatpush.msrb.mxu1 %v795_v22 }
0x134d   :  { %v598_v17 = vadd.f32 %v925_v33, %v519_v29  ;;  %v521_v36 = vadd.f32 %v520_v49, %v442_v34 }
0x134e   :  { %v927_v35 = vpop.eup %926 }
0x134f   :  { %v677_v37 = vadd.f32 %v927_v35, %v598_v17  ;;  %v678_v41 = vmul.f32 %v927_v35, %v1178_v54  ;;  %v600_v43 = vadd.f32 %v599_v39, %v521_v36  ;;  %v864_v54 = vld [vmem:[%s1272_s6] ss:$0 sm:$0xff] }
0x1351   :  { %v679_v44 = vadd.f32 %v678_v41, %v600_v43 }
0x1385   :  { %v752_v26 = vpop.xlane.xlu1 %751 }
0x1386   :  { %v753_v28 = vmax.f32 %v752_v26, 0.0 }
0x1388   :  { %v754_v32 = vmul.f32 1.442695, %v753_v28 }
0x138a   :  { %928 = vpow2.f32 %v754_v32 }
0x1390   :  { %v929_v4 = vpop.eup %928 }
0x1391   :  { %v756_v40 = vadd.f32 %v929_v4, %v677_v37  ;;  %v757_v19 = vmul.f32 %v929_v4, %v1221_v38 }
0x1393   :  { %930 = vrcp.f32 %v756_v40  ;;  %v758_v46 = vadd.f32 %v757_v19, %v679_v44 }
0x1399   :  { %v931_v47 = vpop.eup %930 }
0x139a   :  { %v760_v48 = vmul.f32 %v931_v47, %v758_v46 }
0x139c   :  { %770 = vrot.lane.b32.xlu2 %v760_v48, %s935_s21 }
0x13f6   :  { %v771_v50 = vpop.permute.xlu2 %770 }
0x13f7   :  { %853 = vmatmul.msk.f32.vlgmr.msrb.gmra.mxu3 %vm125_vm8, %v771_v50 }
0x147a   :  { %v791_v38 = vpop.f32.mrf.mxu3 }
0x147b   :  { %v792_v51 = vadd.f32 %v864_v54, %v791_v38 }
0x147d   :  { %v794_v52 = vmax.f32 %v792_v51, 0.0 }
0x147f   :  { %854 = vmatmul.msk.f32.vlgmr.msrb.gmra.mxu1 %vm801_vm6, %v794_v52 }
0x14fc   :  { %v822_v56 = vpop.f32.mrf.mxu1 }
0x14fd   :  { %v823_v57 = vadd.f32 %v865_v55, %v822_v56 }
0x14ff   :  { %825 = vst [vmem:[%s1276_s9] sm:$0xff] %v823_v57 }

</bundles_post_ra>
